<compile_context>
chip_gen: v7x
topology: tpu7x:2x2x1
jax: 0.10.0
libtpu: 0.0.40
codegen_flags: <defaults>
</compile_context>

<pallas_src>
import functools

import jax
import jax.numpy as jnp
from jax import lax
from jax.experimental import pallas as pl
from jax.experimental.pallas import tpu as pltpu


def _fused_kernel(x_ref, bmat_ref, bias_ref, sel_ref, gamma_ref, beta_ref,
                  phase_ref, o_ref, y_scr, inv_scr, shift_scr,
                  *, TB, N, H, W, C_in, C_out, eps):
    p = pl.program_id(0)   # 0 = conv phase, 1 = BN/ReLU/scale phase
    b = pl.program_id(1)   # batch block
    count = float(N * H * W)

    # ---------------- phase 0: conv for this batch block -> VMEM scratch ----
    @pl.when(p == 0)
    def _conv():
        for t in range(TB):
            x_img = x_ref[pl.ds(t * H, H), :]                    # (H, W*C_in)
            # One matmul per kernel row kh; B[kh] is banded over (w_in, w_out),
            # so all horizontal taps (and the horizontal zero padding) are a
            # single MXU dot with K = W*C_in, N = W*C_out (128 lanes).
            p0 = jnp.dot(x_img, bmat_ref[0], preferred_element_type=jnp.float32)
            p1 = jnp.dot(x_img, bmat_ref[1], preferred_element_type=jnp.float32)
            p2 = jnp.dot(x_img, bmat_ref[2], preferred_element_type=jnp.float32)
            base = (b * TB + t) * H
            # Vertical taps: y[h] = p0[h-1] + p1[h] + p2[h+1]  (zero padded).
            y_scr[pl.ds(base, H), :] = p1 + bias_ref[...]
            y_scr[pl.ds(base + 1, H - 1), :] += p0[:H - 1, :]
            y_scr[pl.ds(base, H - 1), :] += p2[1:, :]

    # -------- phase 1, first step: batch stats -> folded scale/shift (once) --
    @pl.when(jnp.logical_and(p == 1, b == 0))
    def _stats():
        yall = y_scr[...]                                        # (N*H, W*C_out)
        sel = sel_ref[...]                                       # (W*C_out, C_out)
        sum_c = jnp.sum(jnp.dot(yall, sel, preferred_element_type=jnp.float32),
                        axis=0, keepdims=True)                   # (1, C_out)
        mean_c = sum_c / count
        mean_l = jnp.tile(mean_c, (1, W))                        # (1, W*C_out)
        d = yall - mean_l
        var_c = jnp.sum(jnp.dot(d * d, sel, preferred_element_type=jnp.float32),
                        axis=0, keepdims=True) / count           # centered, biased
        inv_c = gamma_ref[...] * lax.rsqrt(var_c + eps)          # (1, C_out)
        shift_c = beta_ref[...] - mean_c * inv_c
        inv_scr[...] = jnp.tile(inv_c, (1, W))                   # per-lane scale
        shift_scr[...] = jnp.tile(shift_c, (1, W))               # per-lane shift

    # ---------------- phase 1: y*inv + shift -> ReLU -> * (1 + 0.2*phase) ----
    @pl.when(p == 1)
    def _apply():
        factor = 1.0 + 0.2 * phase_ref[0, 0]
        y = y_scr[pl.ds(b * (TB * H), TB * H), :]
        z = jnp.maximum(y * inv_scr[...] + shift_scr[...], 0.0)
        o_ref[...] = z * factor                                  # 128-lane stores


def dynamic_conv_block(x_nchw, weight_oihw, bias, gamma, beta, game_phase,
                       eps=1e-5, batch_block=None):
    N, C_in, H, W = x_nchw.shape
    C_out = weight_oihw.shape[0]
    WC_in, WC_out = W * C_in, W * C_out

    TB = N if batch_block is None else batch_block
    assert N % TB == 0, "batch_block must divide N"
    NB = N // TB

    # Fused-NHWC rows: xf[n*H + h, w*C_in + ci] = x[n, ci, h, w].
    # (only a tiny layout op in XLA; no jnp.pad anywhere)
    xf = jnp.transpose(x_nchw, (0, 2, 3, 1)).astype(jnp.float32).reshape(N * H, WC_in)

    # Banded conv weights: B[kh][w_in*C_in + ci, w_out*C_out + co]
    #   = weight[co, ci, kh, kw]  iff  w_in == w_out + (kw - 1).
    w = weight_oihw.astype(jnp.float32)
    wi = jnp.arange(W)[:, None]
    wo = jnp.arange(W)[None, :]
    bmat = jnp.zeros((3, W, C_in, W, C_out), jnp.float32)
    for kh in range(3):
        for kw in range(3):
            band = (wi == wo + (kw - 1)).astype(jnp.float32)       # (W, W)
            wk = jnp.transpose(w[:, :, kh, kw])                    # (C_in, C_out)
            bmat = bmat.at[kh].add(band[:, None, :, None] * wk[None, :, None, :])
    bmat = bmat.reshape(3, WC_in, WC_out)

    bias_row = jnp.tile(bias.astype(jnp.float32), W).reshape(1, WC_out)
    # Channel selector (W*C_out, C_out): per-channel reductions become matmuls.
    sel = (jnp.arange(WC_out)[:, None] % C_out ==
           jnp.arange(C_out)[None, :]).astype(jnp.float32)
    g = gamma.reshape(1, C_out).astype(jnp.float32)
    be = beta.reshape(1, C_out).astype(jnp.float32)
    phase = jnp.asarray(game_phase, jnp.float32).reshape(1, 1)

    kernel = functools.partial(_fused_kernel, TB=TB, N=N, H=H, W=W,
                               C_in=C_in, C_out=C_out, eps=eps)

    # TODO(synk): BatchNorm2d's running_mean/running_var buffer update (a
    # training-time side effect) is not produced; only the forward output is.
    out_flat = pl.pallas_call(
        kernel,
        grid=(2, NB),                       # (phase, batch block)
        in_specs=[
            # phase 0 walks the batch blocks; phase 1 parks on the last block
            # so no input is refetched.
            pl.BlockSpec((TB * H, WC_in),
                         lambda p, b: ((1 - p) * b + p * (NB - 1), 0)),
            pl.BlockSpec((3, WC_in, WC_out), lambda p, b: (0, 0, 0)),
            pl.BlockSpec((1, WC_out), lambda p, b: (0, 0)),
            pl.BlockSpec((WC_out, C_out), lambda p, b: (0, 0)),
            pl.BlockSpec((1, C_out), lambda p, b: (0, 0)),
            pl.BlockSpec((1, C_out), lambda p, b: (0, 0)),
            pl.BlockSpec((1, 1), lambda p, b: (0, 0),
                         memory_space=pltpu.MemorySpace.SMEM),
        ],
        # Output written only in phase 1; during phase 0 park on block 0 so the
        # block-index sequence stays consecutive and nothing is flushed early.
        out_specs=pl.BlockSpec((TB * H, WC_out), lambda p, b: (p * b, 0)),
        out_shape=jax.ShapeDtypeStruct((N * H, WC_out), jnp.float32),
        scratch_shapes=[
            pltpu.VMEM((N * H, WC_out), jnp.float32),   # conv output, whole batch
            pltpu.VMEM((1, WC_out), jnp.float32),       # folded BN scale (per lane)
            pltpu.VMEM((1, WC_out), jnp.float32),       # folded BN shift (per lane)
        ],
        compiler_params=pltpu.CompilerParams(
            dimension_semantics=("arbitrary", "arbitrary")),
    )(xf, bmat, bias_row, sel, g, be, phase)

    # fused-NHWC rows -> NCHW (pure layout; 16 KiB at these sizes).
    return jnp.transpose(out_flat.reshape(N, H, W, C_out), (0, 3, 1, 2))


def _reference(x, w, b, gamma, beta, phase, eps=1e-5):
    y = lax.conv_general_dilated(
        x, w, window_strides=(1, 1), padding=((1, 1), (1, 1)),
        dimension_numbers=("NCHW", "OIHW", "NCHW"))
    y = y + b.reshape(1, -1, 1, 1)
    mean = jnp.mean(y, axis=(0, 2, 3), keepdims=True)
    var = jnp.mean((y - mean) ** 2, axis=(0, 2, 3), keepdims=True)
    yn = (y - mean) * lax.rsqrt(var + eps) * gamma.reshape(1, -1, 1, 1) \
         + beta.reshape(1, -1, 1, 1)
    return jnp.maximum(yn, 0.0) * (1.0 + 0.2 * phase)


if __name__ == "__main__":
    N, C_in, C_out, H, W = 2, 4, 8, 16, 16

    key = jax.random.PRNGKey(0)
    kx, kw_, kb = jax.random.split(key, 3)
    x = jax.random.normal(kx, (N, C_in, H, W), jnp.float32)
    weight = jax.random.normal(kw_, (C_out, C_in, 3, 3), jnp.float32) * 0.1
    bias = jax.random.normal(kb, (C_out,), jnp.float32) * 0.1
    gamma = jnp.ones((C_out,), jnp.float32)   # PyTorch BatchNorm2d init
    beta = jnp.zeros((C_out,), jnp.float32)
    game_phase = jnp.float32(0.5)

    out = jax.jit(dynamic_conv_block)(x, weight, bias, gamma, beta, game_phase)
    out = jax.block_until_ready(out)

    ref = _reference(x, weight, bias, gamma, beta, game_phase)
    assert out.shape == (N, C_out, H, W)
    err = jnp.max(jnp.abs(out - ref))
    assert jnp.allclose(out, ref, rtol=2e-3, atol=2e-3), f"max abs err {err}"

    print("KERNEL_OK")
</pallas_src>

<mosaic_0001>
module attributes {stable_mosaic.version = 11 : i64} {
  func.func @_fused_kernel(%arg0: i32, %arg1: i32, %arg2: memref<32x64xf32, #tpu.memory_space<vmem>>, %arg3: memref<3x64x128xf32, #tpu.memory_space<vmem>>, %arg4: memref<1x128xf32, #tpu.memory_space<vmem>>, %arg5: memref<128x8xf32, #tpu.memory_space<vmem>>, %arg6: memref<1x8xf32, #tpu.memory_space<vmem>>, %arg7: memref<1x8xf32, #tpu.memory_space<vmem>>, %arg8: memref<1x1xf32, #tpu.memory_space<smem>>, %arg9: memref<32x128xf32, #tpu.memory_space<vmem>>, %arg10: memref<32x128xf32, #tpu.memory_space<vmem>>, %arg11: memref<1x128xf32, #tpu.memory_space<vmem>>, %arg12: memref<1x128xf32, #tpu.memory_space<vmem>>) attributes {dimension_semantics = [#tpu.dimension_semantics<arbitrary>, #tpu.dimension_semantics<arbitrary>], iteration_bounds = array<i64: 2, 1>, scalar_prefetch = 0 : i64, scratch_operands = 3 : i64, tpu.core_type = #tpu.core_type<tc>, window_params = [{transform_indices = @transform_0, window_bounds = array<i64: 32, 64>}, {pipeline_mode = #tpu.pipeline_mode<synchronous>, transform_indices = @transform_1, window_bounds = array<i64: 3, 64, 128>}, {pipeline_mode = #tpu.pipeline_mode<synchronous>, transform_indices = @transform_2, window_bounds = array<i64: 1, 128>}, {pipeline_mode = #tpu.pipeline_mode<synchronous>, transform_indices = @transform_3, window_bounds = array<i64: 128, 8>}, {pipeline_mode = #tpu.pipeline_mode<synchronous>, transform_indices = @transform_4, window_bounds = array<i64: 1, 8>}, {pipeline_mode = #tpu.pipeline_mode<synchronous>, transform_indices = @transform_5, window_bounds = array<i64: 1, 8>}, {transform_indices = @transform_6, window_bounds = array<i64: 1, 1>}, {transform_indices = @transform_7, window_bounds = array<i64: 32, 128>}]} {
    %c0_i32 = arith.constant 0 : i32
    %0 = arith.cmpi eq, %arg0, %c0_i32 : i32
    %1 = arith.extui %0 : i1 to i32
    %c0_i32_0 = arith.constant 0 : i32
    %2 = arith.cmpi ne, %1, %c0_i32_0 : i32
    scf.if %2 {
      %c0 = arith.constant 0 : index
      %c0_5 = arith.constant 0 : index
      %11 = vector.load %arg2[%c0, %c0_5] : memref<32x64xf32, #tpu.memory_space<vmem>>, vector<16x64xf32>
      %c0_6 = arith.constant 0 : index
      %c0_7 = arith.constant 0 : index
      %c0_8 = arith.constant 0 : index
      %12 = vector.load %arg3[%c0_6, %c0_7, %c0_8] : memref<3x64x128xf32, #tpu.memory_space<vmem>>, vector<1x64x128xf32>
      %13 = vector.shape_cast %12 : vector<1x64x128xf32> to vector<64x128xf32>
      %cst = arith.constant dense<0.000000e+00> : vector<16x128xf32>
      %14 = tpu.matmul %11, %13, %cst {dimension_numbers = #tpu.dot_dimension_numbers<[1], [0], [0], [1], [0, 0, 1, 1], [], []>} : vector<16x64xf32>, vector<64x128xf32>, vector<16x128xf32> -> vector<16x128xf32>
      %c1 = arith.constant 1 : index
      %c0_9 = arith.constant 0 : index
      %c0_10 = arith.constant 0 : index
      %15 = vector.load %arg3[%c1, %c0_9, %c0_10] : memref<3x64x128xf32, #tpu.memory_space<vmem>>, vector<1x64x128xf32>
      %16 = vector.shape_cast %15 : vector<1x64x128xf32> to vector<64x128xf32>
      %cst_11 = arith.constant dense<0.000000e+00> : vector<16x128xf32>
      %17 = tpu.matmul %11, %16, %cst_11 {dimension_numbers = #tpu.dot_dimension_numbers<[1], [0], [0], [1], [0, 0, 1, 1], [], []>} : vector<16x64xf32>, vector<64x128xf32>, vector<16x128xf32> -> vector<16x128xf32>
      %c2 = arith.constant 2 : index
      %c0_12 = arith.constant 0 : index
      %c0_13 = arith.constant 0 : index
      %18 = vector.load %arg3[%c2, %c0_12, %c0_13] : memref<3x64x128xf32, #tpu.memory_space<vmem>>, vector<1x64x128xf32>
      %19 = vector.shape_cast %18 : vector<1x64x128xf32> to vector<64x128xf32>
      %cst_14 = arith.constant dense<0.000000e+00> : vector<16x128xf32>
      %20 = tpu.matmul %11, %19, %cst_14 {dimension_numbers = #tpu.dot_dimension_numbers<[1], [0], [0], [1], [0, 0, 1, 1], [], []>} : vector<16x64xf32>, vector<64x128xf32>, vector<16x128xf32> -> vector<16x128xf32>
      %c2_i32 = arith.constant 2 : i32
      %21 = arith.muli %arg1, %c2_i32 : i32
      %c0_i32_15 = arith.constant 0 : i32
      %22 = arith.addi %21, %c0_i32_15 : i32
      %c16_i32 = arith.constant 16 : i32
      %23 = arith.muli %22, %c16_i32 : i32
      %c0_16 = arith.constant 0 : index
      %c0_17 = arith.constant 0 : index
      %24 = vector.load %arg4[%c0_16, %c0_17] : memref<1x128xf32, #tpu.memory_space<vmem>>, vector<1x128xf32>
      %25 = vector.broadcast %24 : vector<1x128xf32> to vector<16x128xf32>
      %26 = arith.addf %17, %25 : vector<16x128xf32>
      %27 = arith.index_cast %23 : i32 to index
      %c0_18 = arith.constant 0 : index
      %28 = vector.load %arg10[%27, %c0_18] : memref<32x128xf32, #tpu.memory_space<vmem>>, vector<16x128xf32>
      tpu.vector_store %arg10[%27, %c0_18], %26 {strides = array<i32>} : memref<32x128xf32, #tpu.memory_space<vmem>>, vector<16x128xf32>,
      %c1_i32_19 = arith.constant 1 : i32
      %29 = arith.addi %23, %c1_i32_19 : i32
      %30 = arith.index_cast %29 : i32 to index
      %c0_20 = arith.constant 0 : index
      %31 = vector.load %arg10[%30, %c0_20] : memref<32x128xf32, #tpu.memory_space<vmem>>, vector<15x128xf32>
      %32 = vector.extract_strided_slice %14 {offsets = [0, 0], sizes = [15, 128], strides = [1, 1]} : vector<16x128xf32> to vector<15x128xf32>
      %33 = arith.addf %31, %32 : vector<15x128xf32>
      %34 = arith.index_cast %29 : i32 to index
      %c0_21 = arith.constant 0 : index
      %35 = vector.load %arg10[%34, %c0_21] : memref<32x128xf32, #tpu.memory_space<vmem>>, vector<15x128xf32>
      tpu.vector_store %arg10[%34, %c0_21], %33 {strides = array<i32>} : memref<32x128xf32, #tpu.memory_space<vmem>>, vector<15x128xf32>,
      %36 = arith.index_cast %23 : i32 to index
      %c0_22 = arith.constant 0 : index
      %37 = vector.load %arg10[%36, %c0_22] : memref<32x128xf32, #tpu.memory_space<vmem>>, vector<15x128xf32>
      %38 = vector.extract_strided_slice %20 {offsets = [1, 0], sizes = [15, 128], strides = [1, 1]} : vector<16x128xf32> to vector<15x128xf32>
      %39 = arith.addf %37, %38 : vector<15x128xf32>
      %40 = arith.index_cast %23 : i32 to index
      %c0_23 = arith.constant 0 : index
      %41 = vector.load %arg10[%40, %c0_23] : memref<32x128xf32, #tpu.memory_space<vmem>>, vector<15x128xf32>
      tpu.vector_store %arg10[%40, %c0_23], %39 {strides = array<i32>} : memref<32x128xf32, #tpu.memory_space<vmem>>, vector<15x128xf32>,
      %c16 = arith.constant 16 : index
      %c0_24 = arith.constant 0 : index
      %42 = vector.load %arg2[%c16, %c0_24] : memref<32x64xf32, #tpu.memory_space<vmem>>, vector<16x64xf32>
      %c0_25 = arith.constant 0 : index
      %c0_26 = arith.constant 0 : index
      %c0_27 = arith.constant 0 : index
      %43 = vector.load %arg3[%c0_25, %c0_26, %c0_27] : memref<3x64x128xf32, #tpu.memory_space<vmem>>, vector<1x64x128xf32>
      %44 = vector.shape_cast %43 : vector<1x64x128xf32> to vector<64x128xf32>
      %cst_28 = arith.constant dense<0.000000e+00> : vector<16x128xf32>
      %45 = tpu.matmul %42, %44, %cst_28 {dimension_numbers = #tpu.dot_dimension_numbers<[1], [0], [0], [1], [0, 0, 1, 1], [], []>} : vector<16x64xf32>, vector<64x128xf32>, vector<16x128xf32> -> vector<16x128xf32>
      %c1_29 = arith.constant 1 : index
      %c0_30 = arith.constant 0 : index
      %c0_31 = arith.constant 0 : index
      %46 = vector.load %arg3[%c1_29, %c0_30, %c0_31] : memref<3x64x128xf32, #tpu.memory_space<vmem>>, vector<1x64x128xf32>
      %47 = vector.shape_cast %46 : vector<1x64x128xf32> to vector<64x128xf32>
      %cst_32 = arith.constant dense<0.000000e+00> : vector<16x128xf32>
      %48 = tpu.matmul %42, %47, %cst_32 {dimension_numbers = #tpu.dot_dimension_numbers<[1], [0], [0], [1], [0, 0, 1, 1], [], []>} : vector<16x64xf32>, vector<64x128xf32>, vector<16x128xf32> -> vector<16x128xf32>
      %c2_33 = arith.constant 2 : index
      %c0_34 = arith.constant 0 : index
      %c0_35 = arith.constant 0 : index
      %49 = vector.load %arg3[%c2_33, %c0_34, %c0_35] : memref<3x64x128xf32, #tpu.memory_space<vmem>>, vector<1x64x128xf32>
      %50 = vector.shape_cast %49 : vector<1x64x128xf32> to vector<64x128xf32>
      %cst_36 = arith.constant dense<0.000000e+00> : vector<16x128xf32>
      %51 = tpu.matmul %42, %50, %cst_36 {dimension_numbers = #tpu.dot_dimension_numbers<[1], [0], [0], [1], [0, 0, 1, 1], [], []>} : vector<16x64xf32>, vector<64x128xf32>, vector<16x128xf32> -> vector<16x128xf32>
      %c2_i32_37 = arith.constant 2 : i32
      %52 = arith.muli %arg1, %c2_i32_37 : i32
      %c1_i32_38 = arith.constant 1 : i32
      %53 = arith.addi %52, %c1_i32_38 : i32
      %c16_i32_39 = arith.constant 16 : i32
      %54 = arith.muli %53, %c16_i32_39 : i32
      %c0_40 = arith.constant 0 : index
      %c0_41 = arith.constant 0 : index
      %55 = vector.load %arg4[%c0_40, %c0_41] : memref<1x128xf32, #tpu.memory_space<vmem>>, vector<1x128xf32>
      %56 = vector.broadcast %55 : vector<1x128xf32> to vector<16x128xf32>
      %57 = arith.addf %48, %56 : vector<16x128xf32>
      %58 = arith.index_cast %54 : i32 to index
      %c0_42 = arith.constant 0 : index
      %59 = vector.load %arg10[%58, %c0_42] : memref<32x128xf32, #tpu.memory_space<vmem>>, vector<16x128xf32>
      tpu.vector_store %arg10[%58, %c0_42], %57 {strides = array<i32>} : memref<32x128xf32, #tpu.memory_space<vmem>>, vector<16x128xf32>,
      %c1_i32_43 = arith.constant 1 : i32
      %60 = arith.addi %54, %c1_i32_43 : i32
      %61 = arith.index_cast %60 : i32 to index
      %c0_44 = arith.constant 0 : index
      %62 = vector.load %arg10[%61, %c0_44] : memref<32x128xf32, #tpu.memory_space<vmem>>, vector<15x128xf32>
      %63 = vector.extract_strided_slice %45 {offsets = [0, 0], sizes = [15, 128], strides = [1, 1]} : vector<16x128xf32> to vector<15x128xf32>
      %64 = arith.addf %62, %63 : vector<15x128xf32>
      %65 = arith.index_cast %60 : i32 to index
      %c0_45 = arith.constant 0 : index
      %66 = vector.load %arg10[%65, %c0_45] : memref<32x128xf32, #tpu.memory_space<vmem>>, vector<15x128xf32>
      tpu.vector_store %arg10[%65, %c0_45], %64 {strides = array<i32>} : memref<32x128xf32, #tpu.memory_space<vmem>>, vector<15x128xf32>,
      %67 = arith.index_cast %54 : i32 to index
      %c0_46 = arith.constant 0 : index
      %68 = vector.load %arg10[%67, %c0_46] : memref<32x128xf32, #tpu.memory_space<vmem>>, vector<15x128xf32>
      %69 = vector.extract_strided_slice %51 {offsets = [1, 0], sizes = [15, 128], strides = [1, 1]} : vector<16x128xf32> to vector<15x128xf32>
      %70 = arith.addf %68, %69 : vector<15x128xf32>
      %71 = arith.index_cast %54 : i32 to index
      %c0_47 = arith.constant 0 : index
      %72 = vector.load %arg10[%71, %c0_47] : memref<32x128xf32, #tpu.memory_space<vmem>>, vector<15x128xf32>
      tpu.vector_store %arg10[%71, %c0_47], %70 {strides = array<i32>} : memref<32x128xf32, #tpu.memory_space<vmem>>, vector<15x128xf32>,
    } else {
    }
    %c1_i32 = arith.constant 1 : i32
    %3 = arith.cmpi eq, %arg0, %c1_i32 : i32
    %c0_i32_1 = arith.constant 0 : i32
    %4 = arith.cmpi eq, %arg1, %c0_i32_1 : i32
    %5 = arith.andi %3, %4 : i1
    %6 = arith.extui %5 : i1 to i32
    %c0_i32_2 = arith.constant 0 : i32
    %7 = arith.cmpi ne, %6, %c0_i32_2 : i32
    scf.if %7 {
      %c0 = arith.constant 0 : index
      %c0_5 = arith.constant 0 : index
      %11 = vector.load %arg10[%c0, %c0_5] : memref<32x128xf32, #tpu.memory_space<vmem>>, vector<32x128xf32>
      %c0_6 = arith.constant 0 : index
      %c0_7 = arith.constant 0 : index
      %12 = vector.load %arg5[%c0_6, %c0_7] : memref<128x8xf32, #tpu.memory_space<vmem>>, vector<128x8xf32>
      %cst = arith.constant dense<0.000000e+00> : vector<32x8xf32>
      %13 = tpu.matmul %11, %12, %cst {dimension_numbers = #tpu.dot_dimension_numbers<[1], [0], [0], [1], [0, 0, 1, 1], [], []>} : vector<32x128xf32>, vector<128x8xf32>, vector<32x8xf32> -> vector<32x8xf32>
      %cst_8 = arith.constant dense<0.000000e+00> : vector<8xf32>
      %14 = vector.multi_reduction <add>, %13, %cst_8 [0] : vector<32x8xf32> to vector<8xf32>
      %15 = vector.shape_cast %14 : vector<8xf32> to vector<1x8xf32>
      %cst_9 = arith.constant 5.120000e+02 : f32
      %16 = vector.broadcast %cst_9 : f32 to vector<1x8xf32>
      %17 = arith.divf %15, %16 : vector<1x8xf32>
      %18 = tpu.concatenate %17, %17, %17, %17, %17, %17, %17, %17, %17, %17, %17, %17, %17, %17, %17, %17 in 1 : vector<1x8xf32>, vector<1x8xf32>, vector<1x8xf32>, vector<1x8xf32>, vector<1x8xf32>, vector<1x8xf32>, vector<1x8xf32>, vector<1x8xf32>, vector<1x8xf32>, vector<1x8xf32>, vector<1x8xf32>, vector<1x8xf32>, vector<1x8xf32>, vector<1x8xf32>, vector<1x8xf32>, vector<1x8xf32> -> vector<1x128xf32>
      %19 = vector.broadcast %18 : vector<1x128xf32> to vector<32x128xf32>
      %20 = arith.subf %11, %19 : vector<32x128xf32>
      %21 = arith.mulf %20, %20 : vector<32x128xf32>
      %cst_10 = arith.constant dense<0.000000e+00> : vector<32x8xf32>
      %22 = tpu.matmul %21, %12, %cst_10 {dimension_numbers = #tpu.dot_dimension_numbers<[1], [0], [0], [1], [0, 0, 1, 1], [], []>} : vector<32x128xf32>, vector<128x8xf32>, vector<32x8xf32> -> vector<32x8xf32>
      %cst_11 = arith.constant dense<0.000000e+00> : vector<8xf32>
      %23 = vector.multi_reduction <add>, %22, %cst_11 [0] : vector<32x8xf32> to vector<8xf32>
      %24 = vector.shape_cast %23 : vector<8xf32> to vector<1x8xf32>
      %cst_12 = arith.constant 5.120000e+02 : f32
      %25 = vector.broadcast %cst_12 : f32 to vector<1x8xf32>
      %26 = arith.divf %24, %25 : vector<1x8xf32>
      %c0_13 = arith.constant 0 : index
      %c0_14 = arith.constant 0 : index
      %27 = vector.load %arg6[%c0_13, %c0_14] : memref<1x8xf32, #tpu.memory_space<vmem>>, vector<1x8xf32>
      %cst_15 = arith.constant 9.99999974E-6 : f32
      %28 = vector.broadcast %cst_15 : f32 to vector<1x8xf32>
      %29 = arith.addf %26, %28 : vector<1x8xf32>
      %30 = math.rsqrt %29 : vector<1x8xf32>
      %31 = arith.mulf %27, %30 : vector<1x8xf32>
      %c0_16 = arith.constant 0 : index
      %c0_17 = arith.constant 0 : index
      %32 = vector.load %arg7[%c0_16, %c0_17] : memref<1x8xf32, #tpu.memory_space<vmem>>, vector<1x8xf32>
      %33 = arith.mulf %17, %31 : vector<1x8xf32>
      %34 = arith.subf %32, %33 : vector<1x8xf32>
      %35 = tpu.concatenate %31, %31, %31, %31, %31, %31, %31, %31, %31, %31, %31, %31, %31, %31, %31, %31 in 1 : vector<1x8xf32>, vector<1x8xf32>, vector<1x8xf32>, vector<1x8xf32>, vector<1x8xf32>, vector<1x8xf32>, vector<1x8xf32>, vector<1x8xf32>, vector<1x8xf32>, vector<1x8xf32>, vector<1x8xf32>, vector<1x8xf32>, vector<1x8xf32>, vector<1x8xf32>, vector<1x8xf32>, vector<1x8xf32> -> vector<1x128xf32>
      %c0_18 = arith.constant 0 : index
      %c0_19 = arith.constant 0 : index
      %36 = vector.load %arg11[%c0_18, %c0_19] : memref<1x128xf32, #tpu.memory_space<vmem>>, vector<1x128xf32>
      tpu.vector_store %arg11[%c0_18, %c0_19], %35 {strides = array<i32>} : memref<1x128xf32, #tpu.memory_space<vmem>>, vector<1x128xf32>,
      %37 = tpu.concatenate %34, %34, %34, %34, %34, %34, %34, %34, %34, %34, %34, %34, %34, %34, %34, %34 in 1 : vector<1x8xf32>, vector<1x8xf32>, vector<1x8xf32>, vector<1x8xf32>, vector<1x8xf32>, vector<1x8xf32>, vector<1x8xf32>, vector<1x8xf32>, vector<1x8xf32>, vector<1x8xf32>, vector<1x8xf32>, vector<1x8xf32>, vector<1x8xf32>, vector<1x8xf32>, vector<1x8xf32>, vector<1x8xf32> -> vector<1x128xf32>
      %c0_20 = arith.constant 0 : index
      %c0_21 = arith.constant 0 : index
      %38 = vector.load %arg12[%c0_20, %c0_21] : memref<1x128xf32, #tpu.memory_space<vmem>>, vector<1x128xf32>
      tpu.vector_store %arg12[%c0_20, %c0_21], %37 {strides = array<i32>} : memref<1x128xf32, #tpu.memory_space<vmem>>, vector<1x128xf32>,
    } else {
    }
    %c1_i32_3 = arith.constant 1 : i32
    %8 = arith.cmpi eq, %arg0, %c1_i32_3 : i32
    %9 = arith.extui %8 : i1 to i32
    %c0_i32_4 = arith.constant 0 : i32
    %10 = arith.cmpi ne, %9, %c0_i32_4 : i32
    scf.if %10 {
      %c0 = arith.constant 0 : index
      %c0_5 = arith.constant 0 : index
      %11 = memref.load %arg8[%c0, %c0_5] : memref<1x1xf32, #tpu.memory_space<smem>>
      %cst = arith.constant 2.000000e-01 : f32
      %12 = arith.mulf %cst, %11 : f32
      %cst_6 = arith.constant 1.000000e+00 : f32
      %13 = arith.addf %cst_6, %12 : f32
      %c32_i32 = arith.constant 32 : i32
      %14 = arith.muli %arg1, %c32_i32 : i32
      %15 = arith.index_cast %14 : i32 to index
      %c0_7 = arith.constant 0 : index
      %16 = vector.load %arg10[%15, %c0_7] : memref<32x128xf32, #tpu.memory_space<vmem>>, vector<32x128xf32>
      %c0_8 = arith.constant 0 : index
      %c0_9 = arith.constant 0 : index
      %17 = vector.load %arg11[%c0_8, %c0_9] : memref<1x128xf32, #tpu.memory_space<vmem>>, vector<1x128xf32>
      %18 = vector.broadcast %17 : vector<1x128xf32> to vector<32x128xf32>
      %19 = arith.mulf %16, %18 : vector<32x128xf32>
      %c0_10 = arith.constant 0 : index
      %c0_11 = arith.constant 0 : index
      %20 = vector.load %arg12[%c0_10, %c0_11] : memref<1x128xf32, #tpu.memory_space<vmem>>, vector<1x128xf32>
      %21 = vector.broadcast %20 : vector<1x128xf32> to vector<32x128xf32>
      %22 = arith.addf %19, %21 : vector<32x128xf32>
      %cst_12 = arith.constant 0.000000e+00 : f32
      %23 = vector.broadcast %cst_12 : f32 to vector<32x128xf32>
      %24 = arith.maximumf %22, %23 : vector<32x128xf32>
      %25 = vector.broadcast %13 : f32 to vector<32x128xf32>
      %26 = arith.mulf %24, %25 : vector<32x128xf32>
      %c0_13 = arith.constant 0 : index
      %c0_14 = arith.constant 0 : index
      %27 = vector.load %arg9[%c0_13, %c0_14] : memref<32x128xf32, #tpu.memory_space<vmem>>, vector<32x128xf32>
      tpu.vector_store %arg9[%c0_13, %c0_14], %26 {strides = array<i32>} : memref<32x128xf32, #tpu.memory_space<vmem>>, vector<32x128xf32>,
    } else {
    }
    return
  }
  func.func @transform_0(%arg0: i32, %arg1: i32) -> (i32, i32) {
    %c1_i32 = arith.constant 1 : i32
    %0 = arith.subi %c1_i32, %arg0 : i32
    %1 = arith.muli %0, %arg1 : i32
    %c0_i32 = arith.constant 0 : i32
    %2 = arith.muli %arg0, %c0_i32 : i32
    %3 = arith.addi %1, %2 : i32
    %c0_i32_0 = arith.constant 0 : i32
    %c0_i32_1 = arith.constant 0 : i32
    return %3, %c0_i32_0 : i32, i32
  }
  func.func @transform_1(%arg0: i32, %arg1: i32) -> (i32, i32, i32) {
    %c0_i32 = arith.constant 0 : i32
    %c0_i32_0 = arith.constant 0 : i32
    %c0_i32_1 = arith.constant 0 : i32
    %c0_i32_2 = arith.constant 0 : i32
    return %c0_i32, %c0_i32_0, %c0_i32_1 : i32, i32, i32
  }
  func.func @transform_2(%arg0: i32, %arg1: i32) -> (i32, i32) {
    %c0_i32 = arith.constant 0 : i32
    %c0_i32_0 = arith.constant 0 : i32
    %c0_i32_1 = arith.constant 0 : i32
    return %c0_i32, %c0_i32_0 : i32, i32
  }
  func.func @transform_3(%arg0: i32, %arg1: i32) -> (i32, i32) {
    %c0_i32 = arith.constant 0 : i32
    %c0_i32_0 = arith.constant 0 : i32
    %c0_i32_1 = arith.constant 0 : i32
    return %c0_i32, %c0_i32_0 : i32, i32
  }
  func.func @transform_4(%arg0: i32, %arg1: i32) -> (i32, i32) {
    %c0_i32 = arith.constant 0 : i32
    %c0_i32_0 = arith.constant 0 : i32
    %c0_i32_1 = arith.constant 0 : i32
    return %c0_i32, %c0_i32_0 : i32, i32
  }
  func.func @transform_5(%arg0: i32, %arg1: i32) -> (i32, i32) {
    %c0_i32 = arith.constant 0 : i32
    %c0_i32_0 = arith.constant 0 : i32
    %c0_i32_1 = arith.constant 0 : i32
    return %c0_i32, %c0_i32_0 : i32, i32
  }
  func.func @transform_6(%arg0: i32, %arg1: i32) -> (i32, i32) {
    %c0_i32 = arith.constant 0 : i32
    %c0_i32_0 = arith.constant 0 : i32
    %c0_i32_1 = arith.constant 0 : i32
    return %c0_i32, %c0_i32_0 : i32, i32
  }
  func.func @transform_7(%arg0: i32, %arg1: i32) -> (i32, i32) {
    %0 = arith.muli %arg0, %arg1 : i32
    %c0_i32 = arith.constant 0 : i32
    %c0_i32_0 = arith.constant 0 : i32
    return %0, %c0_i32 : i32, i32
  }
}

</mosaic_0001>

<bundles_post_ra>
// kernel: tile.8
= control target key start
LH: loop header
LB: loop body
LE: loop exit
PB: predicated region body
PF: predicated region fallthrough
CT: control target
= control target key end

     0   :  { %s28_s0 = inlined_call_operand.vmem [shape: f32[8], index: 0, kind: input, shape index: {}]   ;;  %s29_s1 = inlined_call_operand.vmem [shape: f32[16,8], index: 1, kind: output, shape index: {}]  }
   0x1   :  { %v4_v0 = vld [vmem:[%s28_s0] ss:$0 sm:$0xff] }
   0x2   :  { %5 = vst [vmem:[%s29_s1] sm:$0xff] %v4_v0  ;;  %8 = vst [vmem:[%s29_s1 + $0x8] sm:$0xff] %v4_v0 }

// kernel: tile.9
= control target key start
LH: loop header
LB: loop body
LE: loop exit
PB: predicated region body
PF: predicated region fallthrough
CT: control target
= control target key end

     0   :  { %s131_s10 = smov 120   ;;  %s132_s11 = smov 104   ;;  %vm3_vm0 = vcmask 64512   ;;  %vm9_vm1 = vcmask 1048512   ;;  %vm15_vm2 = vcmask 982912   ;;  %vm21_vm3 = vcmask 917312   ;;  %s207_s0 = inlined_call_operand.vmem [shape: f32[16,8], index: 0, kind: input, shape index: {}]   ;;  %s208_s1 = inlined_call_operand.vmem [shape: f32[1,128], index: 1, kind: output, shape index: {}]  }
   0x1   :  { %v101_v0 = vld [vmem:[%s207_s0 + $0xf] sm:$0x1]   ;;  %v103_v1 = vld [vmem:[%s207_s0 + $0xd] sm:$0x1]   ;;  %v102_v2 = vld [vmem:[%s207_s0 + $0xe] sm:$0x1]  }
   0x2   :  { %7 = vrot.lane.b32.xlu0 %v101_v0, %s131_s10  ;;  %19 = vrot.lane.b32.xlu1 %v103_v1, %s132_s11  ;;  %v104_v3 = vld [vmem:[%s207_s0 + $0xc] sm:$0x1]   ;;  %s133_s16 = smov 112   ;;  %s134_s17 = smov 96   ;;  %v105_v4 = vld [vmem:[%s207_s0 + $0xb] sm:$0x1]  }
   0x3   :  { %v106_v5 = vld [vmem:[%s207_s0 + $0xa] sm:$0x1]   ;;  %v2_v6 = vld [vmem:[%s207_s0] sm:$0x1]   ;;  %s135_s24 = smov 88   ;;  %s136_s25 = smov 80  }
   0x4   :  { %4 = vst.msk [vmem:[#allocation0] sm:$0x1] %vm3_vm0, %v2_v6   ;;  %v107_v7 = vld [vmem:[%s207_s0 + $0x9] sm:$0x1]   ;;  %v108_v8 = vld [vmem:[%s207_s0 + $0x8] sm:$0x1]  }
   0x5   :  { %s137_s30 = smov 72   ;;  %s138_s2 = smov 64   ;;  %v109_v9 = vld [vmem:[%s207_s0 + $0x7] sm:$0x1]   ;;  %v110_v10 = vld [vmem:[%s207_s0 + $0x6] sm:$0x1]  }
   0x6   :  { %13 = vrot.lane.b32.xlu0 %v102_v2, %s133_s16  ;;  %25 = vrot.lane.b32.xlu1 %v104_v3, %s134_s17  ;;  %s139_s7 = smov 56   ;;  %s140_s8 = smov 48   ;;  %v111_v11 = vld [vmem:[%s207_s0 + $0x5] sm:$0x1]   ;;  %v112_v12 = vld [vmem:[%s207_s0 + $0x4] sm:$0x1]  }
   0x7   :  { %s141_s13 = smov 40   ;;  %s142_s14 = smov 32   ;;  %v113_v13 = vld [vmem:[%s207_s0 + $0x3] sm:$0x1]   ;;  %v114_v14 = vld [vmem:[%s207_s0 + $0x2] sm:$0x1]  }
   0x8   :  { %s143_s19 = smov 24   ;;  %s144_s20 = smov 16   ;;  %v115_v15 = vld [vmem:[%s207_s0 + $0x1] sm:$0x1]   ;;  %vm27_vm4 = vcmask 851712   ;;  %vm33_vm5 = vcmask 786112  }
   0x9   :  { %s145_s0 = smov 8   ;;  %vm39_vm6 = vcmask 720512   ;;  %vm45_vm7 = vcmask 654912   ;;  %vm51_vm8 = vcmask 589312   ;;  %vm57_vm9 = vcmask 523712  }
   0xa   :  { %31 = vrot.lane.b32.xlu0 %v105_v4, %s135_s24  ;;  %37 = vrot.lane.b32.xlu1 %v106_v5, %s136_s25  ;;  %vm63_vm10 = vcmask 458112   ;;  %vm69_vm11 = vcmask 392512   ;;  %vm75_vm12 = vcmask 326912   ;;  %vm81_vm13 = vcmask 261312  }
   0xb   :  { %vm87_vm14 = vcmask 195712   ;;  %vm93_vm15 = vcmask 130112  }
   0xe   :  { %43 = vrot.lane.b32.xlu0 %v107_v7, %s137_s30  ;;  %49 = vrot.lane.b32.xlu1 %v108_v8, %s138_s2 }
  0x12   :  { %55 = vrot.lane.b32.xlu0 %v109_v9, %s139_s7  ;;  %61 = vrot.lane.b32.xlu1 %v110_v10, %s140_s8 }
  0x16   :  { %67 = vrot.lane.b32.xlu0 %v111_v11, %s141_s13  ;;  %73 = vrot.lane.b32.xlu1 %v112_v12, %s142_s14 }
  0x1a   :  { %79 = vrot.lane.b32.xlu0 %v113_v13, %s143_s19  ;;  %85 = vrot.lane.b32.xlu1 %v114_v14, %s144_s20 }
  0x1e   :  { %91 = vrot.lane.b32.xlu0 %v115_v15, %s145_s0 }
  0x74   :  { %v8_v16 = vpop.permute.xlu0 %7   ;;  %v20_v17 = vpop.permute.xlu1 %19  }
  0x75   :  { %10 = vst.msk [vmem:[#allocation0] sm:$0x1] %vm9_vm1, %v8_v16  }
  0x78   :  { %v14_v18 = vpop.permute.xlu0 %13   ;;  %v26_v19 = vpop.permute.xlu1 %25  }
  0x79   :  { %16 = vst.msk [vmem:[#allocation0] sm:$0x1] %vm15_vm2, %v14_v18  }
  0x7a   :  { %22 = vst.msk [vmem:[#allocation0] sm:$0x1] %vm21_vm3, %v20_v17  }
  0x7b   :  { %28 = vst.msk [vmem:[#allocation0] sm:$0x1] %vm27_vm4, %v26_v19  }
  0x7c   :  { %v32_v20 = vpop.permute.xlu0 %31   ;;  %v38_v21 = vpop.permute.xlu1 %37  }
  0x7d   :  { %34 = vst.msk [vmem:[#allocation0] sm:$0x1] %vm33_vm5, %v32_v20  }
  0x7e   :  { %40 = vst.msk [vmem:[#allocation0] sm:$0x1] %vm39_vm6, %v38_v21  }
  0x80   :  { %v44_v22 = vpop.permute.xlu0 %43   ;;  %v50_v23 = vpop.permute.xlu1 %49  }
  0x81   :  { %46 = vst.msk [vmem:[#allocation0] sm:$0x1] %vm45_vm7, %v44_v22  }
  0x82   :  { %52 = vst.msk [vmem:[#allocation0] sm:$0x1] %vm51_vm8, %v50_v23  }
  0x84   :  { %v56_v24 = vpop.permute.xlu0 %55   ;;  %v62_v25 = vpop.permute.xlu1 %61  }
  0x85   :  { %58 = vst.msk [vmem:[#allocation0] sm:$0x1] %vm57_vm9, %v56_v24  }
  0x86   :  { %64 = vst.msk [vmem:[#allocation0] sm:$0x1] %vm63_vm10, %v62_v25  }
  0x88   :  { %v68_v26 = vpop.permute.xlu0 %67   ;;  %v74_v27 = vpop.permute.xlu1 %73  }
  0x89   :  { %70 = vst.msk [vmem:[#allocation0] sm:$0x1] %vm69_vm11, %v68_v26  }
  0x8a   :  { %76 = vst.msk [vmem:[#allocation0] sm:$0x1] %vm75_vm12, %v74_v27  }
  0x8c   :  { %v80_v28 = vpop.permute.xlu0 %79   ;;  %v86_v29 = vpop.permute.xlu1 %85  }
  0x8d   :  { %82 = vst.msk [vmem:[#allocation0] sm:$0x1] %vm81_vm13, %v80_v28  }
  0x8e   :  { %88 = vst.msk [vmem:[#allocation0] sm:$0x1] %vm87_vm14, %v86_v29  }
  0x90   :  { %v92_v30 = vpop.permute.xlu0 %91  }
  0x91   :  { %94 = vst.msk [vmem:[#allocation0] sm:$0x1] %vm93_vm15, %v92_v30  }
  0x98   :  { %v98_v31 = vld [vmem:[#allocation0] sm:$0x1] }
  0x99   :  { %100 = vst [vmem:[%s208_s1] sm:$0x1] %v98_v31 }

</bundles_post_ra>
